<compile_context>
chip_gen: v7x
topology: tpu7x:2x2x1
jax: 0.10.0
libtpu: 0.0.40
codegen_flags: <defaults>
</compile_context>

<pallas_src>
import functools

import jax
import jax.numpy as jnp
from jax.experimental import pallas as pl
from jax.experimental.pallas import tpu as pltpu


def _make_kernel(C, C_out, pad, Nb, HoWo):
    def kernel(x_ref, sel_ref, o_ref):
        # Zero-fill the padded channel regions (written once per block).
        if pad > 0:
            zeros = jnp.zeros((Nb, pad, HoWo), dtype=o_ref.dtype)
            o_ref[:, :pad, :] = zeros
            o_ref[:, C + pad:, :] = zeros

        sel = sel_ref[...]  # (H*W, Ho*Wo), resident in VMEM across the grid.

        # One 2-D MXU matmul per sample: (C, H*W) @ (H*W, Ho*Wo).
        for j in range(Nb):  # Nb is a small static constant.
            sub = jnp.dot(x_ref[j], sel, preferred_element_type=jnp.float32)
            o_ref[j, pad:pad + C, :] = sub.astype(o_ref.dtype)

    return kernel


def _pick_block_batch(N, per_sample_bytes):
    """Largest divisor of N that keeps VMEM small and >=2 grid blocks."""
    budget = 4 * 1024 * 1024  # per-block bytes; double-buffering stays well
    #                           under v5e's 16 MiB scoped-VMEM default.
    best = 1
    for nb in range(1, min(N, 32) + 1):
        if N % nb:
            continue
        if N >= 2 and N // nb < 2:
            continue  # keep >=2 parallel blocks for v7x's two TensorCores
        if nb * per_sample_bytes > budget:
            continue
        best = nb
    return best


@functools.partial(jax.jit, static_argnames=("planes",))
def lambda_layer_shortcut(x, *, planes):
    """Pallas implementation of the ResNet option-A shortcut lambda."""
    N, C, H, W = x.shape
    pad = planes // 4
    C_out = C + 2 * pad
    Ho = (H + 1) // 2
    Wo = (W + 1) // 2
    HW = H * W
    HoWo = Ho * Wo
    itemsize = jnp.dtype(x.dtype).itemsize

    # Flatten spatial dims into the lane axis (free reshape in HBM).
    x3 = x.reshape(N, C, HW)

    # 0/1 selection matrix: sel[h*W + w, ho*Wo + wo] = 1 iff h==2*ho, w==2*wo.
    h_idx = jnp.arange(HW, dtype=jnp.int32) // W
    w_idx = jnp.arange(HW, dtype=jnp.int32) % W
    ho_idx = jnp.arange(HoWo, dtype=jnp.int32) // Wo
    wo_idx = jnp.arange(HoWo, dtype=jnp.int32) % Wo
    sel = (
        (h_idx[:, None] == 2 * ho_idx[None, :])
        & (w_idx[:, None] == 2 * wo_idx[None, :])
    ).astype(x.dtype)

    per_sample_bytes = (C * HW + C_out * HoWo) * itemsize
    Nb = _pick_block_batch(N, per_sample_bytes)
    grid = (N // Nb,)

    kernel = _make_kernel(C, C_out, pad, Nb, HoWo)

    bytes_accessed = (N * C * HW + N * C_out * HoWo + HW * HoWo) * itemsize

    out3 = pl.pallas_call(
        kernel,
        out_shape=jax.ShapeDtypeStruct((N, C_out, HoWo), x.dtype),
        grid=grid,
        in_specs=[
            pl.BlockSpec((Nb, C, HW), lambda i: (i, 0, 0)),
            # Constant index_map -> selection matrix stays resident in VMEM.
            pl.BlockSpec((HW, HoWo), lambda i: (0, 0)),
        ],
        out_specs=pl.BlockSpec((Nb, C_out, HoWo), lambda i: (i, 0, 0)),
        compiler_params=pltpu.CompilerParams(
            dimension_semantics=("parallel",)
        ),
        cost_estimate=pl.CostEstimate(
            flops=0, transcendentals=0, bytes_accessed=bytes_accessed
        ),
    )(x3, sel)

    return out3.reshape(N, C_out, Ho, Wo)


def _reference(x, planes):
    """Pure-JAX reference mirroring the PyTorch lambda exactly."""
    pad = planes // 4
    sub = x[:, :, ::2, ::2]
    return jnp.pad(sub, ((0, 0), (pad, pad), (0, 0), (0, 0)))


if __name__ == "__main__":
    key = jax.random.PRNGKey(0)
    N, C, H, W = 2, 4, 16, 16
    planes = 8  # -> pad = 2 per side, C_out = 8 (ResNet option-A shortcut)

    x = jax.random.normal(key, (N, C, H, W), dtype=jnp.float32)

    out = lambda_layer_shortcut(x, planes=planes)
    out = jax.block_until_ready(out)

    ref = _reference(x, planes)
    assert out.shape == ref.shape, (out.shape, ref.shape)
    assert jnp.allclose(out, ref, atol=1e-6, rtol=1e-6), "mismatch vs reference"

    print("KERNEL_OK")
</pallas_src>

<mosaic_0001>
module attributes {stable_mosaic.version = 11 : i64} {
  func.func @kernel(%arg0: i32, %arg1: memref<1x4x256xf32, #tpu.memory_space<vmem>>, %arg2: memref<256x64xf32, #tpu.memory_space<vmem>>, %arg3: memref<1x8x64xf32, #tpu.memory_space<vmem>>) attributes {dimension_semantics = [#tpu.dimension_semantics<parallel>], iteration_bounds = array<i64: 2>, scalar_prefetch = 0 : i64, scratch_operands = 0 : i64, tpu.core_type = #tpu.core_type<tc>, window_params = [{transform_indices = @transform_0, window_bounds = array<i64: 1, 4, 256>}, {pipeline_mode = #tpu.pipeline_mode<synchronous>, transform_indices = @transform_1, window_bounds = array<i64: 256, 64>}, {transform_indices = @transform_2, window_bounds = array<i64: 1, 8, 64>}]} {
    %cst = arith.constant 0.000000e+00 : f32
    %0 = vector.broadcast %cst : f32 to vector<1x2x64xf32>
    %c0 = arith.constant 0 : index
    %c0_0 = arith.constant 0 : index
    %c0_1 = arith.constant 0 : index
    %1 = vector.load %arg3[%c0, %c0_0, %c0_1] : memref<1x8x64xf32, #tpu.memory_space<vmem>>, vector<1x2x64xf32>
    tpu.vector_store %arg3[%c0, %c0_0, %c0_1], %0 {strides = array<i32>} : memref<1x8x64xf32, #tpu.memory_space<vmem>>, vector<1x2x64xf32>,
    %c0_2 = arith.constant 0 : index
    %c6 = arith.constant 6 : index
    %c0_3 = arith.constant 0 : index
    %2 = vector.load %arg3[%c0_2, %c6, %c0_3] : memref<1x8x64xf32, #tpu.memory_space<vmem>>, vector<1x2x64xf32>
    tpu.vector_store %arg3[%c0_2, %c6, %c0_3], %0 {strides = array<i32>} : memref<1x8x64xf32, #tpu.memory_space<vmem>>, vector<1x2x64xf32>,
    %c0_4 = arith.constant 0 : index
    %c0_5 = arith.constant 0 : index
    %3 = vector.load %arg2[%c0_4, %c0_5] : memref<256x64xf32, #tpu.memory_space<vmem>>, vector<256x64xf32>
    %c0_6 = arith.constant 0 : index
    %c0_7 = arith.constant 0 : index
    %c0_8 = arith.constant 0 : index
    %4 = vector.load %arg1[%c0_6, %c0_7, %c0_8] : memref<1x4x256xf32, #tpu.memory_space<vmem>>, vector<1x4x256xf32>
    %5 = vector.shape_cast %4 : vector<1x4x256xf32> to vector<4x256xf32>
    %cst_9 = arith.constant dense<0.000000e+00> : vector<4x64xf32>
    %6 = tpu.matmul %5, %3, %cst_9 {dimension_numbers = #tpu.dot_dimension_numbers<[1], [0], [0], [1], [0, 0, 1, 1], [], []>} : vector<4x256xf32>, vector<256x64xf32>, vector<4x64xf32> -> vector<4x64xf32>
    %c0_10 = arith.constant 0 : index
    %c2 = arith.constant 2 : index
    %c0_11 = arith.constant 0 : index
    %7 = vector.load %arg3[%c0_10, %c2, %c0_11] : memref<1x8x64xf32, #tpu.memory_space<vmem>>, vector<1x4x64xf32>
    %8 = vector.shape_cast %7 : vector<1x4x64xf32> to vector<4x64xf32>
    %9 = vector.shape_cast %6 : vector<4x64xf32> to vector<1x4x64xf32>
    tpu.vector_store %arg3[%c0_10, %c2, %c0_11], %9 {strides = array<i32>} : memref<1x8x64xf32, #tpu.memory_space<vmem>>, vector<1x4x64xf32>,
    return
  }
  func.func @transform_0(%arg0: i32) -> (i32, i32, i32) {
    %c0_i32 = arith.constant 0 : i32
    %c0_i32_0 = arith.constant 0 : i32
    %c0_i32_1 = arith.constant 0 : i32
    return %arg0, %c0_i32, %c0_i32_0 : i32, i32, i32
  }
  func.func @transform_1(%arg0: i32) -> (i32, i32) {
    %c0_i32 = arith.constant 0 : i32
    %c0_i32_0 = arith.constant 0 : i32
    %c0_i32_1 = arith.constant 0 : i32
    return %c0_i32, %c0_i32_0 : i32, i32
  }
  func.func @transform_2(%arg0: i32) -> (i32, i32, i32) {
    %c0_i32 = arith.constant 0 : i32
    %c0_i32_0 = arith.constant 0 : i32
    %c0_i32_1 = arith.constant 0 : i32
    return %arg0, %c0_i32, %c0_i32_0 : i32, i32, i32
  }
}

</mosaic_0001>

<bundles_post_ra>
// kernel: lambda_layer_shortcut.1
= control target key start
LH: loop header
LB: loop body
LE: loop exit
PB: predicated region body
PF: predicated region fallthrough
CT: control target
= control target key end

     0   :  { %s418_s9 = smov 0   ;;  %s536_s0 = inlined_call_operand.vmem [shape: f32[2,4,256], index: 0, kind: input, shape index: {}]   ;;  %s537_s1 = inlined_call_operand.vmem [shape: f32[256,64], index: 1, kind: input, shape index: {}]   ;;  %s538_s2 = inlined_call_operand.vmem [shape: f32[2,8,64], index: 2, kind: output, shape index: {}]  }
   0x1 LB: > { %s306_s10 = sadd.s32 4294967295, %s400_s9   ;;  %p310_p0 = scmp.ge.s32.totalorder %s400_s9, 1  ;;  %s400_s9 = sphi %s418_s9, %s12_s9  }
   0x2   : > { %p112_p1 = scmp.lt.s32.totalorder %s400_s9, 3 }
   0x4   : > { %p113_p2 = pnand %p310_p0, %p112_p1 }
   0x5   : > { %v161_v0 = vld [vmem:[%s537_s1 + $0x80] sm:$0xff] (!%p113_p2)  ;;  %v162_v1 = vld [vmem:[%s537_s1 + $0x88] sm:$0xff] (!%p113_p2)  ;;  %p133_p3 = scmp.lt.s32.totalorder (!%p113_p2), %s306_s10, 1  ;;  %v163_v5 = vld [vmem:[%s537_s1 + $0x90] sm:$0xff] (!%p113_p2)  ;;  %vm142_vm0 = vcmask (!%p113_p2), 517120   ;;  %v402_v19 = vmov (!%p113_p2), 0.0  }
   0x6   : > { %116 = sbr.rel (%p113_p2) target bundleno = 256 (0x100), region = 28  ;;  %v145_v2 = vld [vmem:[%s537_s1] sm:$0xff] (!%p113_p2)  ;;  %v352_v3 = vpack.c.bf16 (!%p113_p2), %v162_v1, %v161_v0  ;;  %v146_v4 = vld [vmem:[%s537_s1 + $0x8] sm:$0xff] (!%p113_p2)  ;;  %v164_v6 = vld [vmem:[%s537_s1 + $0x98] sm:$0xff] (!%p113_p2)  ;;  %vm251_vm1 = vcmask (!%p113_p2), 519168  }
   0x7   : > { %v354_v7 = vpack.c.bf16 (!%p113_p2), %v146_v4, %v145_v2  ;;  %v356_v8 = vpack.c.bf16 (!%p113_p2), %v164_v6, %v163_v5  ;;  %v147_v9 = vld [vmem:[%s537_s1 + $0x10] sm:$0xff] (!%p113_p2)  ;;  %v148_v10 = vld [vmem:[%s537_s1 + $0x18] sm:$0xff] (!%p113_p2)  ;;  %v165_v11 = vld [vmem:[%s537_s1 + $0xa0] sm:$0xff] (!%p113_p2) }
   0x8   : > { %353 = vmatprep.subr.bf16.mxu0 (!%p113_p2), %v352_v3  ;;  %v166_v12 = vld [vmem:[%s537_s1 + $0xa8] sm:$0xff] (!%p113_p2)  ;;  %v358_v13 = vpack.c.bf16 (!%p113_p2), %v148_v10, %v147_v9  ;;  %v149_v15 = vld [vmem:[%s537_s1 + $0x20] sm:$0xff] (!%p113_p2)  ;;  %v167_v17 = vld [vmem:[%s537_s1 + $0xb0] sm:$0xff] (!%p113_p2) }
   0x9   : > { %355 = vmatpush3.bf16.msra.mxu0 (!%p113_p2), %v354_v7  ;;  %v360_v14 = vpack.c.bf16 (!%p113_p2), %v166_v12, %v165_v11  ;;  %v150_v16 = vld [vmem:[%s537_s1 + $0x28] sm:$0xff] (!%p113_p2)  ;;  %v168_v18 = vld [vmem:[%s537_s1 + $0xb8] sm:$0xff] (!%p113_p2)  ;;  %v151_v22 = vld [vmem:[%s537_s1 + $0x30] sm:$0xff] (!%p113_p2) }
   0xa   : > { %357 = vmatprep.subr.bf16.mxu0 (!%p113_p2), %v356_v8  ;;  %v362_v20 = vpack.c.bf16 (!%p113_p2), %v150_v16, %v149_v15  ;;  %v364_v21 = vpack.c.bf16 (!%p113_p2), %v168_v18, %v167_v17  ;;  %v152_v23 = vld [vmem:[%s537_s1 + $0x38] sm:$0xff] (!%p113_p2)  ;;  %v169_v24 = vld [vmem:[%s537_s1 + $0xc0] sm:$0xff] (!%p113_p2)  ;;  %v170_v25 = vld [vmem:[%s537_s1 + $0xc8] sm:$0xff] (!%p113_p2) }
   0xb   : > { %v366_v28 = vpack.c.bf16 (!%p113_p2), %v152_v23, %v151_v22  ;;  %v368_v29 = vpack.c.bf16 (!%p113_p2), %v170_v25, %v169_v24  ;;  %v153_v30 = vld [vmem:[%s537_s1 + $0x40] sm:$0xff] (!%p113_p2)  ;;  %v154_v31 = vld [vmem:[%s537_s1 + $0x48] sm:$0xff] (!%p113_p2)  ;;  %v171_v32 = vld [vmem:[%s537_s1 + $0xd0] sm:$0xff] (!%p113_p2) }
   0xc   : > { %v172_v33 = vld [vmem:[%s537_s1 + $0xd8] sm:$0xff] (!%p113_p2)  ;;  %v370_v34 = vpack.c.bf16 (!%p113_p2), %v154_v31, %v153_v30  ;;  %v155_v36 = vld [vmem:[%s537_s1 + $0x50] sm:$0xff] (!%p113_p2)  ;;  %v173_v38 = vld [vmem:[%s537_s1 + $0xe0] sm:$0xff] (!%p113_p2) }
   0xd   : > { %s540_s10 = smov (!%p133_p3, %s306_s10), 1  ;;  %359 = vmatpush3.bf16.msra.mxu0 %v358_v13  ;;  %v372_v35 = vpack.c.bf16 %v172_v33, %v171_v32  ;;  %v156_v37 = vld [vmem:[%s537_s1 + $0x58] sm:$0xff]  ;;  %v174_v39 = vld [vmem:[%s537_s1 + $0xe8] sm:$0xff]  ;;  %v157_v42 = vld [vmem:[%s537_s1 + $0x60] sm:$0xff] }
   0xe   : > { %s316_s3 = sshll.u32 %s540_s10, 3  ;;  %361 = vmatprep.subr.bf16.mxu0 %v360_v14  ;;  %v374_v40 = vpack.c.bf16 %v156_v37, %v155_v36  ;;  %v376_v41 = vpack.c.bf16 %v174_v39, %v173_v38  ;;  %v158_v43 = vld [vmem:[%s537_s1 + $0x68] sm:$0xff]  ;;  %v175_v44 = vld [vmem:[%s537_s1 + $0xf0] sm:$0xff]  ;;  %v176_v45 = vld [vmem:[%s537_s1 + $0xf8] sm:$0xff] }
   0xf   : > { %s465_s12 = scalar_lea.vmem %s538_s2, %s316_s3  ;;  %s137_s18 = scalar_lea.vmem %s536_s0, %s316_s3  ;;  %v378_v46 = vpack.c.bf16 %v158_v43, %v157_v42  ;;  %v380_v47 = vpack.c.bf16 %v176_v45, %v175_v44  ;;  %v159_v48 = vld [vmem:[%s537_s1 + $0x70] sm:$0xff]  ;;  %v160_v49 = vld [vmem:[%s537_s1 + $0x78] sm:$0xff] }
  0x10   : > { %143 = vst.msk [vmem:[%s465_s12] sm:$0x3] %vm142_vm0, %v402_v19  ;;  %144 = vst.msk [vmem:[%s465_s12 + $0x6] sm:$0x3] %vm142_vm0, %v402_v19  ;;  %v177_v26 = vld [vmem:[%s137_s18] sm:$0xff]  ;;  %v382_v50 = vpack.c.bf16 %v160_v49, %v159_v48 }
  0x11   : > { %v179_v27 = vcombine.high %v177_v26, %v177_v26  ;;  %363 = vmatpush3.bf16.msra.mxu0 %v362_v20 }
  0x12   : > { %365 = vmatprep.subr.bf16.mxu0 %v364_v21 }
  0x13   : > { %245 = vmatprep.mubr.f32.mxu0 %v179_v27 }
  0x15   : > { %367 = vmatpush3.bf16.msra.mxu0 %v366_v28 }
  0x16   : > { %369 = vmatprep.subr.bf16.mxu0 %v368_v29 }
  0x19   : > { %371 = vmatpush3.bf16.msra.mxu0 %v370_v34 }
  0x1a   : > { %373 = vmatprep.subr.bf16.mxu0 %v372_v35 }
  0x1d   : > { %375 = vmatpush3.bf16.msra.mxu0 %v374_v40 }
  0x1e   : > { %377 = vmatprep.subr.bf16.mxu0 %v376_v41 }
  0x21   : > { %379 = vmatpush3.bf16.msra.mxu0 %v378_v46 }
  0x22   : > { %381 = vmatprep.subr.bf16.mxu0 %v380_v47 }
  0x25   : > { %383 = vmatpush3.bf16.msra.mxu0 %v382_v50 }
  0x28   : > { %246 = vmatmul.mubr.f32.vlgmr.msra.gmra.mrb[0].mxu0 %v177_v26 }
  0xfb   : > { %v349_v51 = vpop.f32.mrb[0].mxu0 }
  0xfc   : > { %v350_v52 = vpop.f32.mrb[1].mxu0 }
  0xfd   : > { %v351_v53 = vadd.f32 %v350_v52, %v349_v51 }
  0xff   : > { %252 = vst.msk [vmem:[%s465_s12 + $0x2] sm:$0xf] %vm251_vm1, %v351_v53 }
 0x100 PF: > { %s12_s9 = sadd.s32 1, %s400_s9  }
 0x101   : > { %p9_p4 = scmp.ge.s32.totalorder %s12_s9, 4  }
 0x103   :  { %11 = sbr.rel (!%p9_p4) target bundleno = 1 (0x1), region = 58 }

</bundles_post_ra>
